<compile_context>
chip_gen: v5e
topology: v5e:2x2
jax: 0.10.0
libtpu: 0.0.40
codegen_flags: <defaults>
</compile_context>

<pallas_src>
import functools

import jax
import jax.numpy as jnp
import numpy as np
from jax.experimental import pallas as pl
from jax.experimental.pallas import tpu as pltpu


def _round_up(n, m):
    return ((n + m - 1) // m) * m


def discriminator_kernel(x_ref, w1_ref, b1_ref, w2_ref, b2_ref, w3_ref, b3_ref, o_ref):
    # ---- hidden1 (MXU) + LeakyReLU(0.2), f32 accumulate / f32 elementwise ----
    h = jnp.dot(x_ref[...], w1_ref[...], preferred_element_type=jnp.float32) + b1_ref[...]
    h = jnp.maximum(h, 0.2 * h)                      # LeakyReLU(0.2) as a single VALU max

    # ---- hidden2 (MXU) + LeakyReLU(0.2) ----
    h = jnp.dot(h.astype(w2_ref.dtype), w2_ref[...],
                preferred_element_type=jnp.float32) + b2_ref[...]
    h = jnp.maximum(h, 0.2 * h)

    # ---- predict (out_features == 1): VPU multiply + lane reduce, not a 1-column matmul ----
    logit = jnp.sum(h * w3_ref[...], axis=-1, keepdims=True) + b3_ref[0, 0]   # (TM, 1)

    # ---- sigmoid: exp and approximate reciprocal both land on the EUP slot ----
    y = pl.reciprocal(1.0 + jnp.exp(-logit), approx=True)                     # (TM, 1)

    # ---- lane-dense store: broadcast across the 128-lane block; wrapper slices col 0 ----
    o_ref[...] = jnp.broadcast_to(y, o_ref.shape).astype(o_ref.dtype)


def discriminator_forward(x, params, *, tm=256, matmul_dtype=jnp.float32):
    """x: (B, input_dim) float32.  params: {'w1','b1','w2','b2','w3','b3'} with weights
    stored pre-transposed as (in_features, out_features) (w3: (hid, 1), b3: (1, 1)).

    tm: batch tile.  Re-derive per generation: with ~784-feature inputs keep tm <= ~4096
    on v7x (64 MiB VMEM); v5e/v6e (128 MiB) can take ~2x larger tiles.
    matmul_dtype: jnp.bfloat16 routes the two MXU matmuls through bf16 operands
    (f32 accumulation), halving the activation/weight DMA bytes.
    """
    w1, b1 = params["w1"], params["b1"]
    w2, b2 = params["w2"], params["b2"]
    w3, b3 = params["w3"], params["b3"]

    B, d_in = x.shape
    hid = w1.shape[1]

    LANE = 128
    d_pad = _round_up(d_in, LANE)
    h_pad = _round_up(hid, LANE)
    b_pad = _round_up(B, tm)
    grid = (b_pad // tm,)

    # Zero-pad feature dims to lane width and batch to the tile size.  Zero padding is
    # exact: padded input columns hit zero weight rows, padded hidden units get zero
    # weight/bias so they stay 0 through LeakyReLU and contribute nothing downstream.
    xp = jnp.zeros((b_pad, d_pad), jnp.float32).at[:B, :d_in].set(x)
    w1p = jnp.zeros((d_pad, h_pad), jnp.float32).at[:d_in, :hid].set(w1)
    b1p = jnp.zeros((1, h_pad), jnp.float32).at[:, :hid].set(b1)
    w2p = jnp.zeros((h_pad, h_pad), jnp.float32).at[:hid, :hid].set(w2)
    b2p = jnp.zeros((1, h_pad), jnp.float32).at[:, :hid].set(b2)
    w3p = jnp.zeros((1, h_pad), jnp.float32).at[:, :hid].set(w3.reshape(1, hid))  # VPU row
    b3p = jnp.asarray(b3, jnp.float32).reshape(1, 1)                               # SMEM scalar

    if matmul_dtype != jnp.float32:        # bf16 MXU operands; elementwise stays f32
        xp = xp.astype(matmul_dtype)
        w1p = w1p.astype(matmul_dtype)
        w2p = w2p.astype(matmul_dtype)

    flops = 2 * b_pad * (d_pad * h_pad + h_pad * h_pad + h_pad)
    bytes_accessed = int(
        b_pad * d_pad * xp.dtype.itemsize                      # x stream
        + (d_pad * h_pad + h_pad * h_pad) * w1p.dtype.itemsize  # resident weights
        + (3 * h_pad + 1) * 4                                   # biases + w3 row
        + b_pad * LANE * 4                                      # lane-dense output
    )

    out = pl.pallas_call(
        discriminator_kernel,
        out_shape=jax.ShapeDtypeStruct((b_pad, LANE), jnp.float32),
        grid=grid,
        in_specs=[
            pl.BlockSpec((tm, d_pad), lambda i: (i, 0)),        # x: tiled over batch
            pl.BlockSpec((d_pad, h_pad), lambda i: (0, 0)),     # w1: VMEM-resident
            pl.BlockSpec((1, h_pad), lambda i: (0, 0)),         # b1
            pl.BlockSpec((h_pad, h_pad), lambda i: (0, 0)),     # w2
            pl.BlockSpec((1, h_pad), lambda i: (0, 0)),         # b2
            pl.BlockSpec((1, h_pad), lambda i: (0, 0)),         # w3 row (VPU path)
            pl.BlockSpec(memory_space=pltpu.MemorySpace.SMEM),  # b3 scalar in SMEM
        ],
        out_specs=pl.BlockSpec((tm, LANE), lambda i: (i, 0)),
        compiler_params=pltpu.CompilerParams(
            dimension_semantics=("parallel",),
            vmem_limit_bytes=64 * 1024 * 1024,
        ),
        cost_estimate=pl.CostEstimate(
            flops=flops, transcendentals=b_pad, bytes_accessed=bytes_accessed),
    )(xp, w1p, b1p, w2p, b2p, w3p, b3p)

    return out[:B, :1]


def init_params(key, input_dim, hid_dim):
    """PyTorch nn.Linear-style init (uniform +/- 1/sqrt(fan_in)); weights stored
    transposed as (in_features, out_features)."""
    k = jax.random.split(key, 6)

    def lin(kw, kb, fan_in, fan_out):
        bound = 1.0 / np.sqrt(fan_in)
        w = jax.random.uniform(kw, (fan_in, fan_out), jnp.float32, -bound, bound)
        b = jax.random.uniform(kb, (1, fan_out), jnp.float32, -bound, bound)
        return w, b

    w1, b1 = lin(k[0], k[1], input_dim, hid_dim)
    w2, b2 = lin(k[2], k[3], hid_dim, hid_dim)
    w3, b3 = lin(k[4], k[5], hid_dim, 1)
    return {"w1": w1, "b1": b1, "w2": w2, "b2": b2, "w3": w3, "b3": b3}


def reference_forward(x, p):
    h = x @ p["w1"] + p["b1"]
    h = jnp.where(h > 0, h, 0.2 * h)
    h = h @ p["w2"] + p["b2"]
    h = jnp.where(h > 0, h, 0.2 * h)
    logit = h @ p["w3"] + p["b3"]
    return jax.nn.sigmoid(logit)


if __name__ == "__main__":
    batch, input_dim, hid_dim = 8, 16, 32
    key = jax.random.PRNGKey(0)
    kx, kp = jax.random.split(key)
    x = jax.random.normal(kx, (batch, input_dim), dtype=jnp.float32)
    params = init_params(kp, input_dim, hid_dim)

    ref = reference_forward(x, params)

    # f32 MXU path (tolerance covers the EUP approximate-reciprocal sigmoid)
    out = jax.block_until_ready(discriminator_forward(x, params, tm=128))
    assert out.shape == (batch, 1)
    np.testing.assert_allclose(np.asarray(out), np.asarray(ref), rtol=2e-3, atol=2e-3)

    # bf16 MXU-operand path (v5e/v6e bandwidth+MXU win); looser tolerance for bf16 matmul error
    out_bf16 = jax.block_until_ready(
        discriminator_forward(x, params, tm=128, matmul_dtype=jnp.bfloat16))
    np.testing.assert_allclose(np.asarray(out_bf16), np.asarray(ref), rtol=5e-2, atol=5e-2)

    print("KERNEL_OK")
</pallas_src>

<mosaic_0001>
module attributes {stable_mosaic.version = 11 : i64} {
  func.func @discriminator_kernel(%arg0: i32, %arg1: memref<128x128xf32, #tpu.memory_space<vmem>>, %arg2: memref<128x128xf32, #tpu.memory_space<vmem>>, %arg3: memref<1x128xf32, #tpu.memory_space<vmem>>, %arg4: memref<128x128xf32, #tpu.memory_space<vmem>>, %arg5: memref<1x128xf32, #tpu.memory_space<vmem>>, %arg6: memref<1x128xf32, #tpu.memory_space<vmem>>, %arg7: memref<1x1xf32, #tpu.memory_space<smem>>, %arg8: memref<128x128xf32, #tpu.memory_space<vmem>>) attributes {dimension_semantics = [#tpu.dimension_semantics<parallel>], iteration_bounds = array<i64: 1>, scalar_prefetch = 0 : i64, scratch_operands = 0 : i64, tpu.core_type = #tpu.core_type<tc>, window_params = [{transform_indices = @transform_0, window_bounds = array<i64: 128, 128>}, {pipeline_mode = #tpu.pipeline_mode<synchronous>, transform_indices = @transform_1, window_bounds = array<i64: 128, 128>}, {pipeline_mode = #tpu.pipeline_mode<synchronous>, transform_indices = @transform_2, window_bounds = array<i64: 1, 128>}, {pipeline_mode = #tpu.pipeline_mode<synchronous>, transform_indices = @transform_3, window_bounds = array<i64: 128, 128>}, {pipeline_mode = #tpu.pipeline_mode<synchronous>, transform_indices = @transform_4, window_bounds = array<i64: 1, 128>}, {pipeline_mode = #tpu.pipeline_mode<synchronous>, transform_indices = @transform_5, window_bounds = array<i64: 1, 128>}, {transform_indices = @transform_6, window_bounds = array<i64: 1, 1>}, {transform_indices = @transform_7, window_bounds = array<i64: 128, 128>}]} {
    %c0 = arith.constant 0 : index
    %c0_0 = arith.constant 0 : index
    %0 = vector.load %arg1[%c0, %c0_0] : memref<128x128xf32, #tpu.memory_space<vmem>>, vector<128x128xf32>
    %c0_1 = arith.constant 0 : index
    %c0_2 = arith.constant 0 : index
    %1 = vector.load %arg2[%c0_1, %c0_2] : memref<128x128xf32, #tpu.memory_space<vmem>>, vector<128x128xf32>
    %cst = arith.constant dense<0.000000e+00> : vector<128x128xf32>
    %2 = tpu.matmul %0, %1, %cst {dimension_numbers = #tpu.dot_dimension_numbers<[1], [0], [0], [1], [0, 0, 1, 1], [], []>} : vector<128x128xf32>, vector<128x128xf32>, vector<128x128xf32> -> vector<128x128xf32>
    %c0_3 = arith.constant 0 : index
    %c0_4 = arith.constant 0 : index
    %3 = vector.load %arg3[%c0_3, %c0_4] : memref<1x128xf32, #tpu.memory_space<vmem>>, vector<1x128xf32>
    %4 = vector.broadcast %3 : vector<1x128xf32> to vector<128x128xf32>
    %5 = arith.addf %2, %4 : vector<128x128xf32>
    %cst_5 = arith.constant 2.000000e-01 : f32
    %6 = vector.broadcast %cst_5 : f32 to vector<128x128xf32>
    %7 = arith.mulf %6, %5 : vector<128x128xf32>
    %8 = arith.maximumf %5, %7 : vector<128x128xf32>
    %c0_6 = arith.constant 0 : index
    %c0_7 = arith.constant 0 : index
    %9 = vector.load %arg4[%c0_6, %c0_7] : memref<128x128xf32, #tpu.memory_space<vmem>>, vector<128x128xf32>
    %cst_8 = arith.constant dense<0.000000e+00> : vector<128x128xf32>
    %10 = tpu.matmul %8, %9, %cst_8 {dimension_numbers = #tpu.dot_dimension_numbers<[1], [0], [0], [1], [0, 0, 1, 1], [], []>} : vector<128x128xf32>, vector<128x128xf32>, vector<128x128xf32> -> vector<128x128xf32>
    %c0_9 = arith.constant 0 : index
    %c0_10 = arith.constant 0 : index
    %11 = vector.load %arg5[%c0_9, %c0_10] : memref<1x128xf32, #tpu.memory_space<vmem>>, vector<1x128xf32>
    %12 = vector.broadcast %11 : vector<1x128xf32> to vector<128x128xf32>
    %13 = arith.addf %10, %12 : vector<128x128xf32>
    %cst_11 = arith.constant 2.000000e-01 : f32
    %14 = vector.broadcast %cst_11 : f32 to vector<128x128xf32>
    %15 = arith.mulf %14, %13 : vector<128x128xf32>
    %16 = arith.maximumf %13, %15 : vector<128x128xf32>
    %c0_12 = arith.constant 0 : index
    %c0_13 = arith.constant 0 : index
    %17 = vector.load %arg6[%c0_12, %c0_13] : memref<1x128xf32, #tpu.memory_space<vmem>>, vector<1x128xf32>
    %18 = vector.broadcast %17 : vector<1x128xf32> to vector<128x128xf32>
    %19 = arith.mulf %16, %18 : vector<128x128xf32>
    %cst_14 = arith.constant dense<0.000000e+00> : vector<128xf32>
    %20 = vector.multi_reduction <add>, %19, %cst_14 [1] : vector<128x128xf32> to vector<128xf32>
    %21 = vector.shape_cast %20 : vector<128xf32> to vector<128x1xf32>
    %c0_15 = arith.constant 0 : index
    %c0_16 = arith.constant 0 : index
    %22 = memref.load %arg7[%c0_15, %c0_16] : memref<1x1xf32, #tpu.memory_space<smem>>
    %23 = vector.broadcast %22 : f32 to vector<128x1xf32>
    %24 = arith.addf %21, %23 : vector<128x1xf32>
    %cst_17 = arith.constant 0.000000e+00 : f32
    %25 = vector.broadcast %cst_17 : f32 to vector<128x1xf32>
    %26 = arith.subf %25, %24 : vector<128x1xf32>
    %27 = math.exp %26 : vector<128x1xf32>
    %cst_18 = arith.constant 1.000000e+00 : f32
    %28 = vector.broadcast %cst_18 : f32 to vector<128x1xf32>
    %29 = arith.addf %28, %27 : vector<128x1xf32>
    %30 = tpu.reciprocal %29 {approx = true} : vector<128x1xf32> -> vector<128x1xf32>
    %31 = vector.shape_cast %30 : vector<128x1xf32> to vector<128x1xf32>
    %32 = vector.broadcast %31 : vector<128x1xf32> to vector<128x128xf32>
    %c0_19 = arith.constant 0 : index
    %c0_20 = arith.constant 0 : index
    %33 = vector.load %arg8[%c0_19, %c0_20] : memref<128x128xf32, #tpu.memory_space<vmem>>, vector<128x128xf32>
    tpu.vector_store %arg8[%c0_19, %c0_20], %32 {strides = array<i32>} : memref<128x128xf32, #tpu.memory_space<vmem>>, vector<128x128xf32>,
    return
  }
  func.func @transform_0(%arg0: i32) -> (i32, i32) {
    %c0_i32 = arith.constant 0 : i32
    %c0_i32_0 = arith.constant 0 : i32
    return %arg0, %c0_i32 : i32, i32
  }
  func.func @transform_1(%arg0: i32) -> (i32, i32) {
    %c0_i32 = arith.constant 0 : i32
    %c0_i32_0 = arith.constant 0 : i32
    %c0_i32_1 = arith.constant 0 : i32
    return %c0_i32, %c0_i32_0 : i32, i32
  }
  func.func @transform_2(%arg0: i32) -> (i32, i32) {
    %c0_i32 = arith.constant 0 : i32
    %c0_i32_0 = arith.constant 0 : i32
    %c0_i32_1 = arith.constant 0 : i32
    return %c0_i32, %c0_i32_0 : i32, i32
  }
  func.func @transform_3(%arg0: i32) -> (i32, i32) {
    %c0_i32 = arith.constant 0 : i32
    %c0_i32_0 = arith.constant 0 : i32
    %c0_i32_1 = arith.constant 0 : i32
    return %c0_i32, %c0_i32_0 : i32, i32
  }
  func.func @transform_4(%arg0: i32) -> (i32, i32) {
    %c0_i32 = arith.constant 0 : i32
    %c0_i32_0 = arith.constant 0 : i32
    %c0_i32_1 = arith.constant 0 : i32
    return %c0_i32, %c0_i32_0 : i32, i32
  }
  func.func @transform_5(%arg0: i32) -> (i32, i32) {
    %c0_i32 = arith.constant 0 : i32
    %c0_i32_0 = arith.constant 0 : i32
    %c0_i32_1 = arith.constant 0 : i32
    return %c0_i32, %c0_i32_0 : i32, i32
  }
  func.func @transform_6(%arg0: i32) -> (i32, i32) {
    %c0_i32 = arith.constant 0 : i32
    %c0_i32_0 = arith.constant 0 : i32
    %c0_i32_1 = arith.constant 0 : i32
    return %c0_i32, %c0_i32_0 : i32, i32
  }
  func.func @transform_7(%arg0: i32) -> (i32, i32) {
    %c0_i32 = arith.constant 0 : i32
    %c0_i32_0 = arith.constant 0 : i32
    return %arg0, %c0_i32 : i32, i32
  }
}

</mosaic_0001>

<bundles_post_ra>
// kernel: tpu_custom_call.1
= control target key start
LH: loop header
LB: loop body
LE: loop exit
PB: predicated region body
PF: predicated region fallthrough
CT: control target
= control target key end

     0   :  { %13 = vsyncpa [#allocation4], 0  ;;  %s872_s0 = inlined_call_operand.hbm [shape: f32[128,128], index: 0, kind: input, shape index: {}]   ;;  %s873_s1 = inlined_call_operand.hbm [shape: f32[128,128], index: 1, kind: input, shape index: {}]   ;;  %s874_s2 = inlined_call_operand.vmem [shape: f32[1,128], index: 2, kind: input, shape index: {}]   ;;  %s875_s3 = inlined_call_operand.hbm [shape: f32[128,128], index: 3, kind: input, shape index: {}]   ;;  %s876_s4 = inlined_call_operand.vmem [shape: f32[1,128], index: 4, kind: input, shape index: {}]   ;;  %s877_s5 = inlined_call_operand.vmem [shape: f32[1,128], index: 5, kind: input, shape index: {}]   ;;  %s878_s6 = inlined_call_operand.<no memory space> [shape: f32[1,1], index: 6, kind: input, shape index: {}]   ;;  %s879_s7 = inlined_call_operand.hbm [shape: f32[128,128], index: 7, kind: output, shape index: {}]  }
   0x1   :  { %14 = vsyncpa [#allocation7], 0 }
   0x2   :  { %15 = vsyncpa [#allocation5], 0  ;;  %s33_s26 = sshll.u32 %s873_s1, 4  ;;  %s718_s27 = smov [#allocation6]   ;;  %s34_s26 = int_to_ptr.hbm [resolvable:$true] %s33_s26 }
   0x3   :  { %s35_s28 = sshll.u32 %s718_s27, 4  ;;  %s20_s8 = sshll.u32 %s872_s0, 4  ;;  %s36_s28 = int_to_ptr.vmem [resolvable:$true] %s35_s28  ;;  %s21_s8 = int_to_ptr.hbm [resolvable:$true] %s20_s8 }
   0x4   :  { %s719_s9 = smov 128   ;;  %s720_s10 = smov 8  }
   0x5   :  { %41 = dma.hbm_to_vmem [thread:$0]  %s34_s26, 2048, %s36_s28, [#allocation7], %s719_s9, %s719_s9, %s720_s10  }
   0x6   :  { %s721_s11 = smov [#allocation3]   ;;  %s48_s1 = sshll.u32 %s875_s3, 4  ;;  %s49_s1 = int_to_ptr.hbm [resolvable:$true] %s48_s1 }
   0x7   :  { %s22_s12 = sshll.u32 %s721_s11, 4  ;;  %s722_s0 = smov [#allocation8]   ;;  %s23_s12 = int_to_ptr.vmem [resolvable:$true] %s22_s12 }
   0x8   :  { %28 = dma.hbm_to_vmem [thread:$0]  %s21_s8, 2048, %s23_s12, [#allocation4], %s719_s9, %s719_s9, %s720_s10  }
   0x9   :  { %s50_s15 = sshll.u32 %s722_s0, 4  ;;  %s51_s15 = int_to_ptr.vmem [resolvable:$true] %s50_s15 }
   0xa   :  { %56 = dma.hbm_to_vmem [thread:$0]  %s49_s1, 2048, %s51_s15, [#allocation7], %s719_s9, %s719_s9, %s720_s10  }
   0xb   :  { %712 = dma.done.wait [#allocation4], 2048  }
   0xc   :  { %713 = vsyncadd [#allocation4], 4294965248 }
   0xd   :  { %714 = dma.done.wait [#allocation7], 4096  }
   0xe   :  { %715 = vsyncadd [#allocation7], 4294963200  ;;  %v106_v0 = vld [vmem:[#allocation6 + $0x78] sm:$0xff]  ;;  %v105_v1 = vld [vmem:[#allocation6 + $0x70] sm:$0xff]  ;;  %s497_s23 = sshll.u32 %s879_s7, 4  ;;  %s498_s23 = int_to_ptr.hbm [resolvable:$true] %s497_s23 }
   0xf   :  { %111 = vmatpush.msra.mxu0 %v106_v0  ;;  %511 = vmatpush.msra.mxu2 %v106_v0  ;;  %v104_v2 = vld [vmem:[#allocation6 + $0x68] sm:$0xff]  ;;  %v103_v3 = vld [vmem:[#allocation6 + $0x60] sm:$0xff]  ;;  %v102_v4 = vld [vmem:[#allocation6 + $0x58] sm:$0xff] }
  0x10   :  { %v101_v5 = vld [vmem:[#allocation6 + $0x50] sm:$0xff]  ;;  %v100_v6 = vld [vmem:[#allocation6 + $0x48] sm:$0xff]  ;;  %v99_v7 = vld [vmem:[#allocation6 + $0x40] sm:$0xff] }
  0x11   :  { %112 = vmatpush.msra.mxu0 %v105_v1  ;;  %512 = vmatpush.msra.mxu2 %v105_v1  ;;  %v98_v8 = vld [vmem:[#allocation6 + $0x38] sm:$0xff]  ;;  %v97_v9 = vld [vmem:[#allocation6 + $0x30] sm:$0xff]  ;;  %v96_v10 = vld [vmem:[#allocation6 + $0x28] sm:$0xff] }
  0x12   :  { %v95_v11 = vld [vmem:[#allocation6 + $0x20] sm:$0xff]  ;;  %v94_v12 = vld [vmem:[#allocation6 + $0x18] sm:$0xff]  ;;  %v93_v13 = vld [vmem:[#allocation6 + $0x10] sm:$0xff] }
  0x13   :  { %113 = vmatpush.msra.mxu0 %v104_v2  ;;  %513 = vmatpush.msra.mxu2 %v104_v2  ;;  %v92_v14 = vld [vmem:[#allocation6 + $0x8] sm:$0xff]  ;;  %v91_v15 = vld [vmem:[#allocation6] sm:$0xff]  ;;  %v77_v20 = vld [vmem:[#allocation3 + $0x10] sm:$0xff] }
  0x14   :  { %v75_v16 = vld [vmem:[#allocation3] sm:$0xff]  ;;  %v76_v18 = vld [vmem:[#allocation3 + $0x8] sm:$0xff]  ;;  %v85_v21 = vld [vmem:[#allocation3 + $0x50] sm:$0xff] }
  0x15   :  { %114 = vmatpush.msra.mxu0 %v103_v3  ;;  %514 = vmatpush.msra.mxu2 %v103_v3  ;;  %v83_v17 = vld [vmem:[#allocation3 + $0x40] sm:$0xff]  ;;  %v84_v19 = vld [vmem:[#allocation3 + $0x48] sm:$0xff]  ;;  %v78_v22 = vld [vmem:[#allocation3 + $0x18] sm:$0xff] }
  0x16   :  { %v86_v23 = vld [vmem:[#allocation3 + $0x58] sm:$0xff]  ;;  %v222_v25 = vld [vmem:[#allocation8 + $0x70] sm:$0xff]  ;;  %v221_v26 = vld [vmem:[#allocation8 + $0x68] sm:$0xff] }
  0x17   :  { %115 = vmatpush.msra.mxu0 %v102_v4  ;;  %515 = vmatpush.msra.mxu2 %v102_v4  ;;  %v223_v24 = vld [vmem:[#allocation8 + $0x78] sm:$0xff]  ;;  %v220_v27 = vld [vmem:[#allocation8 + $0x60] sm:$0xff]  ;;  %v218_v31 = vld [vmem:[#allocation8 + $0x50] sm:$0xff] }
  0x18   :  { %228 = vmatpush.msra.mxu1 %v223_v24  ;;  %527 = vmatpush.msra.mxu3 %v223_v24  ;;  %v79_v28 = vld [vmem:[#allocation3 + $0x20] sm:$0xff]  ;;  %v219_v30 = vld [vmem:[#allocation8 + $0x58] sm:$0xff]  ;;  %v217_v32 = vld [vmem:[#allocation8 + $0x48] sm:$0xff] }
  0x19   :  { %116 = vmatpush.msra.mxu0 %v101_v5  ;;  %516 = vmatpush.msra.mxu2 %v101_v5  ;;  %v87_v29 = vld [vmem:[#allocation3 + $0x60] sm:$0xff]  ;;  %v80_v34 = vld [vmem:[#allocation3 + $0x28] sm:$0xff]  ;;  %v215_v36 = vld [vmem:[#allocation8 + $0x38] sm:$0xff] }
  0x1a   :  { %229 = vmatpush.msra.mxu1 %v222_v25  ;;  %528 = vmatpush.msra.mxu3 %v222_v25  ;;  %v216_v33 = vld [vmem:[#allocation8 + $0x40] sm:$0xff]  ;;  %v88_v35 = vld [vmem:[#allocation3 + $0x68] sm:$0xff]  ;;  %v214_v37 = vld [vmem:[#allocation8 + $0x30] sm:$0xff] }
  0x1b   :  { %117 = vmatpush.msra.mxu0 %v100_v6  ;;  %517 = vmatpush.msra.mxu2 %v100_v6  ;;  %v213_v38 = vld [vmem:[#allocation8 + $0x28] sm:$0xff]  ;;  %v212_v39 = vld [vmem:[#allocation8 + $0x20] sm:$0xff]  ;;  %v81_v40 = vld [vmem:[#allocation3 + $0x30] sm:$0xff] }
  0x1c   :  { %230 = vmatpush.msra.mxu1 %v221_v26  ;;  %529 = vmatpush.msra.mxu3 %v221_v26  ;;  %v89_v41 = vld [vmem:[#allocation3 + $0x70] sm:$0xff]  ;;  %v82_v42 = vld [vmem:[#allocation3 + $0x38] sm:$0xff]  ;;  %v209_v46 = vld [vmem:[#allocation8 + $0x8] sm:$0xff] }
  0x1d   :  { %118 = vmatpush.msra.mxu0 %v99_v7  ;;  %518 = vmatpush.msra.mxu2 %v99_v7  ;;  %v90_v43 = vld [vmem:[#allocation3 + $0x78] sm:$0xff]  ;;  %v210_v45 = vld [vmem:[#allocation8 + $0x10] sm:$0xff]  ;;  %v208_v47 = vld [vmem:[#allocation8] sm:$0xff] }
  0x1e   :  { %231 = vmatpush.msra.mxu1 %v220_v27  ;;  %530 = vmatpush.msra.mxu3 %v220_v27  ;;  %v211_v44 = vld [vmem:[#allocation8 + $0x18] sm:$0xff]  ;;  %v785_v48 = vld [vmem:[%s874_s2] ss:$0 sm:$0xff] }
  0x1f   :  { %119 = vmatpush.msra.mxu0 %v98_v8  ;;  %519 = vmatpush.msra.mxu2 %v98_v8 }
  0x20   :  { %232 = vmatpush.msra.mxu1 %v219_v30  ;;  %531 = vmatpush.msra.mxu3 %v219_v30 }
  0x21   :  { %120 = vmatpush.msra.mxu0 %v97_v9  ;;  %520 = vmatpush.msra.mxu2 %v97_v9 }
  0x22   :  { %233 = vmatpush.msra.mxu1 %v218_v31  ;;  %532 = vmatpush.msra.mxu3 %v218_v31 }
  0x23   :  { %121 = vmatpush.msra.mxu0 %v96_v10  ;;  %521 = vmatpush.msra.mxu2 %v96_v10 }
  0x24   :  { %234 = vmatpush.msra.mxu1 %v217_v32  ;;  %533 = vmatpush.msra.mxu3 %v217_v32 }
  0x25   :  { %122 = vmatpush.msra.mxu0 %v95_v11  ;;  %522 = vmatpush.msra.mxu2 %v95_v11 }
  0x26   :  { %235 = vmatpush.msra.mxu1 %v216_v33  ;;  %534 = vmatpush.msra.mxu3 %v216_v33 }
  0x27   :  { %123 = vmatpush.msra.mxu0 %v94_v12  ;;  %523 = vmatpush.msra.mxu2 %v94_v12 }
  0x28   :  { %236 = vmatpush.msra.mxu1 %v215_v36  ;;  %535 = vmatpush.msra.mxu3 %v215_v36 }
  0x29   :  { %124 = vmatpush.msra.mxu0 %v93_v13  ;;  %524 = vmatpush.msra.mxu2 %v93_v13 }
  0x2a   :  { %237 = vmatpush.msra.mxu1 %v214_v37  ;;  %536 = vmatpush.msra.mxu3 %v214_v37 }
  0x2b   :  { %125 = vmatpush.msra.mxu0 %v92_v14  ;;  %525 = vmatpush.msra.mxu2 %v92_v14 }
  0x2c   :  { %238 = vmatpush.msra.mxu1 %v213_v38  ;;  %537 = vmatpush.msra.mxu3 %v213_v38 }
  0x2d   :  { %126 = vmatpush.msra.mxu0 %v91_v15  ;;  %526 = vmatpush.msra.mxu2 %v91_v15 }
  0x2e   :  { %127 = vmatmul.f32.vlgmr.msra.gmra.mxu0 %v75_v16  ;;  %151 = vmatmul.f32.vlgmr.msra.gmra.mxu2 %v83_v17 }
  0x2f   :  { %239 = vmatpush.msra.mxu1 %v212_v39  ;;  %538 = vmatpush.msra.mxu3 %v212_v39 }
  0x31   :  { %240 = vmatpush.msra.mxu1 %v211_v44  ;;  %539 = vmatpush.msra.mxu3 %v211_v44 }
  0x33   :  { %241 = vmatpush.msra.mxu1 %v210_v45  ;;  %540 = vmatpush.msra.mxu3 %v210_v45 }
  0x35   :  { %242 = vmatpush.msra.mxu1 %v209_v46  ;;  %541 = vmatpush.msra.mxu3 %v209_v46 }
  0x36   :  { %130 = vmatmul.f32.gmra.mxu0 %v76_v18  ;;  %154 = vmatmul.f32.gmra.mxu2 %v84_v19 }
  0x37   :  { %243 = vmatpush.msra.mxu1 %v208_v47  ;;  %542 = vmatpush.msra.mxu3 %v208_v47 }
  0x3e   :  { %133 = vmatmul.f32.gmra.mxu0 %v77_v20  ;;  %157 = vmatmul.f32.gmra.mxu2 %v85_v21 }
  0x46   :  { %136 = vmatmul.f32.gmra.mxu0 %v78_v22  ;;  %160 = vmatmul.f32.gmra.mxu2 %v86_v23 }
  0x4e   :  { %139 = vmatmul.f32.gmra.mxu0 %v79_v28  ;;  %163 = vmatmul.f32.gmra.mxu2 %v87_v29 }
  0x56   :  { %142 = vmatmul.f32.gmra.mxu0 %v80_v34  ;;  %166 = vmatmul.f32.gmra.mxu2 %v88_v35 }
  0x5e   :  { %145 = vmatmul.f32.gmra.mxu0 %v81_v40  ;;  %169 = vmatmul.f32.gmra.mxu2 %v89_v41 }
  0x66   :  { %148 = vmatmul.f32.gmra.mxu0 %v82_v42  ;;  %172 = vmatmul.f32.gmra.mxu2 %v90_v43 }
  0xab   :  { %v128_v49 = vpop.f32.mrf.mxu0 }
  0xac   :  { %v129_v50 = vadd.f32 %v785_v48, %v128_v49 }
  0xae   :  { %v176_v51 = vmul.f32 0.2, %v129_v50 }
  0xb0   :  { %v192_v52 = vmax.f32 %v129_v50, %v176_v51  ;;  %v806_v50 = vld [vmem:[%s876_s4] ss:$0 sm:$0xff] }
  0xb1   :  { %v152_v53 = vpop.f32.mrf.mxu2 }
  0xb2   :  { %v153_v54 = vadd.f32 %v785_v48, %v152_v53  ;;  %244 = vmatmul.f32.vlgmr.msra.gmra.mxu1 %v192_v52 }
  0xb3   :  { %v131_v55 = vpop.f32.mrf.mxu0 }
  0xb4   :  { %v184_v56 = vmul.f32 0.2, %v153_v54  ;;  %v132_v57 = vadd.f32 %v785_v48, %v131_v55 }
  0xb6   :  { %v177_v58 = vmul.f32 0.2, %v132_v57  ;;  %v200_v59 = vmax.f32 %v153_v54, %v184_v56  ;;  %v812_v54 = vld [vmem:[%s877_s5] ss:$0 sm:$0xff] }
  0xb8   :  { %268 = vmatmul.f32.vlgmr.msra.gmra.mxu3 %v200_v59  ;;  %v193_v60 = vmax.f32 %v132_v57, %v177_v58 }
  0xb9   :  { %v155_v61 = vpop.f32.mrf.mxu2 }
  0xba   :  { %v156_v62 = vadd.f32 %v785_v48, %v155_v61  ;;  %247 = vmatmul.f32.gmra.mxu1 %v193_v60 }
  0xbb   :  { %v134_v63 = vpop.f32.mrf.mxu0 }
  0xbc   :  { %v185_v0 = vmul.f32 0.2, %v156_v62  ;;  %v135_v1 = vadd.f32 %v785_v48, %v134_v63 }
  0xbe   :  { %v178_v2 = vmul.f32 0.2, %v135_v1  ;;  %v201_v3 = vmax.f32 %v156_v62, %v185_v0 }
  0xc0   :  { %271 = vmatmul.f32.gmra.mxu3 %v201_v3  ;;  %v194_v4 = vmax.f32 %v135_v1, %v178_v2 }
  0xc1   :  { %v158_v5 = vpop.f32.mrf.mxu2 }
  0xc2   :  { %v159_v6 = vadd.f32 %v785_v48, %v158_v5  ;;  %250 = vmatmul.f32.gmra.mxu1 %v194_v4 }
  0xc3   :  { %v137_v7 = vpop.f32.mrf.mxu0 }
  0xc4   :  { %v186_v8 = vmul.f32 0.2, %v159_v6  ;;  %v138_v9 = vadd.f32 %v785_v48, %v137_v7 }
  0xc6   :  { %v179_v10 = vmul.f32 0.2, %v138_v9  ;;  %v202_v11 = vmax.f32 %v159_v6, %v186_v8 }
  0xc8   :  { %274 = vmatmul.f32.gmra.mxu3 %v202_v11  ;;  %v195_v12 = vmax.f32 %v138_v9, %v179_v10 }
  0xc9   :  { %v161_v13 = vpop.f32.mrf.mxu2 }
  0xca   :  { %v162_v14 = vadd.f32 %v785_v48, %v161_v13  ;;  %253 = vmatmul.f32.gmra.mxu1 %v195_v12 }
  0xcb   :  { %v140_v15 = vpop.f32.mrf.mxu0 }
  0xcc   :  { %v187_v16 = vmul.f32 0.2, %v162_v14  ;;  %v141_v17 = vadd.f32 %v785_v48, %v140_v15 }
  0xce   :  { %v180_v18 = vmul.f32 0.2, %v141_v17  ;;  %v203_v19 = vmax.f32 %v162_v14, %v187_v16 }
  0xd0   :  { %277 = vmatmul.f32.gmra.mxu3 %v203_v19  ;;  %v196_v20 = vmax.f32 %v141_v17, %v180_v18 }
  0xd1   :  { %v164_v21 = vpop.f32.mrf.mxu2 }
  0xd2   :  { %v165_v22 = vadd.f32 %v785_v48, %v164_v21  ;;  %256 = vmatmul.f32.gmra.mxu1 %v196_v20 }
  0xd3   :  { %v143_v23 = vpop.f32.mrf.mxu0 }
  0xd4   :  { %v188_v24 = vmul.f32 0.2, %v165_v22  ;;  %v144_v25 = vadd.f32 %v785_v48, %v143_v23 }
  0xd6   :  { %v181_v26 = vmul.f32 0.2, %v144_v25  ;;  %v204_v27 = vmax.f32 %v165_v22, %v188_v24 }
  0xd8   :  { %280 = vmatmul.f32.gmra.mxu3 %v204_v27  ;;  %v197_v28 = vmax.f32 %v144_v25, %v181_v26 }
  0xd9   :  { %v167_v29 = vpop.f32.mrf.mxu2 }
  0xda   :  { %v168_v30 = vadd.f32 %v785_v48, %v167_v29  ;;  %259 = vmatmul.f32.gmra.mxu1 %v197_v28 }
  0xdb   :  { %v146_v31 = vpop.f32.mrf.mxu0 }
  0xdc   :  { %v189_v32 = vmul.f32 0.2, %v168_v30  ;;  %v147_v33 = vadd.f32 %v785_v48, %v146_v31 }
  0xde   :  { %v182_v34 = vmul.f32 0.2, %v147_v33  ;;  %v205_v35 = vmax.f32 %v168_v30, %v189_v32 }
  0xe0   :  { %283 = vmatmul.f32.gmra.mxu3 %v205_v35  ;;  %v198_v36 = vmax.f32 %v147_v33, %v182_v34 }
  0xe1   :  { %v170_v37 = vpop.f32.mrf.mxu2 }
  0xe2   :  { %v171_v38 = vadd.f32 %v785_v48, %v170_v37  ;;  %262 = vmatmul.f32.gmra.mxu1 %v198_v36 }
  0xe3   :  { %v149_v39 = vpop.f32.mrf.mxu0 }
  0xe4   :  { %v190_v40 = vmul.f32 0.2, %v171_v38  ;;  %v150_v41 = vadd.f32 %v785_v48, %v149_v39 }
  0xe6   :  { %v183_v42 = vmul.f32 0.2, %v150_v41  ;;  %v206_v43 = vmax.f32 %v171_v38, %v190_v40 }
  0xe8   :  { %286 = vmatmul.f32.gmra.mxu3 %v206_v43  ;;  %v199_v44 = vmax.f32 %v150_v41, %v183_v42 }
  0xe9   :  { %v173_v45 = vpop.f32.mrf.mxu2 }
  0xea   :  { %v174_v46 = vadd.f32 %v785_v48, %v173_v45  ;;  %265 = vmatmul.f32.gmra.mxu1 %v199_v44 }
  0xec   :  { %v191_v47 = vmul.f32 0.2, %v174_v46 }
  0xee   :  { %v207_v49 = vmax.f32 %v174_v46, %v191_v47 }
  0xf0   :  { %289 = vmatmul.f32.gmra.mxu3 %v207_v49 }
 0x12f   :  { %v245_v51 = vpop.f32.mrf.mxu1 }
 0x130   :  { %v246_v52 = vadd.f32 %v806_v50, %v245_v51 }
 0x132   :  { %v293_v53 = vmul.f32 0.2, %v246_v52 }
 0x134   :  { %v309_v55 = vmax.f32 %v246_v52, %v293_v53 }
 0x136   :  { %v329_v48 = vmul.f32 %v812_v54, %v309_v55 }
 0x137   :  { %v248_v56 = vpop.f32.mrf.mxu1 }
 0x138   :  { %v249_v57 = vadd.f32 %v806_v50, %v248_v56  ;;  %345 = vadd.xlane.f32.xlu0 %v329_v48 }
 0x13a   :  { %v294_v58 = vmul.f32 0.2, %v249_v57 }
 0x13b   :  { %v269_v59 = vpop.f32.mrf.mxu3 }
 0x13c   :  { %v310_v60 = vmax.f32 %v249_v57, %v294_v58  ;;  %v270_v61 = vadd.f32 %v806_v50, %v269_v59 }
 0x13e   :  { %v301_v62 = vmul.f32 0.2, %v270_v61  ;;  %v330_v63 = vmul.f32 %v812_v54, %v310_v60 }
 0x13f   :  { %v251_v0 = vpop.f32.mrf.mxu1 }
 0x140   :  { %v252_v1 = vadd.f32 %v806_v50, %v251_v0  ;;  %347 = vadd.xlane.f32.xlu0 %v330_v63  ;;  %v317_v2 = vmax.f32 %v270_v61, %v301_v62 }
 0x142   :  { %v295_v3 = vmul.f32 0.2, %v252_v1  ;;  %v337_v4 = vmul.f32 %v812_v54, %v317_v2 }
 0x143   :  { %v272_v5 = vpop.f32.mrf.mxu3 }
 0x144   :  { %v273_v6 = vadd.f32 %v806_v50, %v272_v5  ;;  %361 = vadd.xlane.f32.xlu2 %v337_v4  ;;  %v311_v7 = vmax.f32 %v252_v1, %v295_v3  ;;  %v848_v5 = vstv %s878_s6  ;;  %s723_s6 = smov [#allocation9]  }
 0x145   :  { %s495_s20 = sshll.u32 %s723_s6, 4  ;;  %s496_s20 = int_to_ptr.vmem [resolvable:$true] %s495_s20 }
 0x146   :  { %v302_v8 = vmul.f32 0.2, %v273_v6  ;;  %v331_v9 = vmul.f32 %v812_v54, %v311_v7 }
 0x147   :  { %v254_v10 = vpop.f32.mrf.mxu1 }
 0x148   :  { %v318_v11 = vmax.f32 %v273_v6, %v302_v8  ;;  %v255_v12 = vadd.f32 %v806_v50, %v254_v10  ;;  %349 = vadd.xlane.f32.xlu1 %v331_v9 }
 0x14a   :  { %v296_v13 = vmul.f32 0.2, %v255_v12  ;;  %v338_v14 = vmul.f32 %v812_v54, %v318_v11 }
 0x14b   :  { %v275_v15 = vpop.f32.mrf.mxu3 }
 0x14c   :  { %v312_v16 = vmax.f32 %v255_v12, %v296_v13  ;;  %v276_v17 = vadd.f32 %v806_v50, %v275_v15  ;;  %363 = vadd.xlane.f32.xlu0 %v338_v14 }
 0x14e   :  { %v303_v18 = vmul.f32 0.2, %v276_v17  ;;  %v332_v19 = vmul.f32 %v812_v54, %v312_v16 }
 0x14f   :  { %v257_v20 = vpop.f32.mrf.mxu1 }
 0x150   :  { %v258_v21 = vadd.f32 %v806_v50, %v257_v20  ;;  %351 = vadd.xlane.f32.xlu1 %v332_v19  ;;  %v319_v22 = vmax.f32 %v276_v17, %v303_v18 }
 0x152   :  { %v297_v23 = vmul.f32 0.2, %v258_v21  ;;  %v339_v29 = vmul.f32 %v812_v54, %v319_v22 }
 0x153   :  { %v278_v24 = vpop.f32.mrf.mxu3 }
 0x154   :  { %v313_v25 = vmax.f32 %v258_v21, %v297_v23  ;;  %v279_v26 = vadd.f32 %v806_v50, %v278_v24 }
 0x156   :  { %v304_v27 = vmul.f32 0.2, %v279_v26  ;;  %v333_v28 = vmul.f32 %v812_v54, %v313_v25 }
 0x157   :  { %v260_v30 = vpop.f32.mrf.mxu1 }
 0x158   :  { %353 = vadd.xlane.f32.xlu2 %v333_v28  ;;  %365 = vadd.xlane.f32.xlu1 %v339_v29  ;;  %v320_v31 = vmax.f32 %v279_v26, %v304_v27  ;;  %v261_v32 = vadd.f32 %v806_v50, %v260_v30 }
 0x15a   :  { %v298_v35 = vmul.f32 0.2, %v261_v32  ;;  %v340_v37 = vmul.f32 %v812_v54, %v320_v31 }
 0x15b   :  { %v281_v33 = vpop.f32.mrf.mxu3 }
 0x15c   :  { %v282_v34 = vadd.f32 %v806_v50, %v281_v33  ;;  %v314_v41 = vmax.f32 %v261_v32, %v298_v35 }
 0x15e   :  { %v305_v36 = vmul.f32 0.2, %v282_v34  ;;  %v334_v46 = vmul.f32 %v812_v54, %v314_v41 }
 0x15f   :  { %v263_v38 = vpop.f32.mrf.mxu1 }
 0x160   :  { %v321_v39 = vmax.f32 %v282_v34, %v305_v36  ;;  %v264_v40 = vadd.f32 %v806_v50, %v263_v38  ;;  %367 = vadd.xlane.f32.xlu2 %v340_v37 }
 0x162   :  { %v299_v42 = vmul.f32 0.2, %v264_v40  ;;  %v341_v43 = vmul.f32 %v812_v54, %v321_v39 }
 0x163   :  { %v284_v44 = vpop.f32.mrf.mxu3 }
 0x164   :  { %369 = vadd.xlane.f32.xlu0 %v341_v43  ;;  %v315_v45 = vmax.f32 %v264_v40, %v299_v42  ;;  %v285_v51 = vadd.f32 %v806_v50, %v284_v44 }
 0x166   :  { %v335_v53 = vmul.f32 %v812_v54, %v315_v45  ;;  %v306_v57 = vmul.f32 0.2, %v285_v51 }
 0x167   :  { %v266_v47 = vpop.f32.mrf.mxu1 }
 0x168   :  { %v267_v49 = vadd.f32 %v806_v50, %v266_v47  ;;  %355 = vadd.xlane.f32.xlu2 %v334_v46  ;;  %v322_v61 = vmax.f32 %v285_v51, %v306_v57 }
 0x16a   :  { %v300_v52 = vmul.f32 0.2, %v267_v49  ;;  %v342_v2 = vmul.f32 %v812_v54, %v322_v61 }
 0x16b   :  { %v287_v55 = vpop.f32.mrf.mxu3 }
 0x16c   :  { %v316_v48 = vmax.f32 %v267_v49, %v300_v52  ;;  %v288_v56 = vadd.f32 %v806_v50, %v287_v55  ;;  %357 = vadd.xlane.f32.xlu0 %v335_v53 }
 0x16e   :  { %v307_v58 = vmul.f32 0.2, %v288_v56  ;;  %v336_v59 = vmul.f32 %v812_v54, %v316_v48 }
 0x170   :  { %v323_v60 = vmax.f32 %v288_v56, %v307_v58  ;;  %359 = vadd.xlane.f32.xlu1 %v336_v59 }
 0x172   :  { %v343_v62 = vmul.f32 %v812_v54, %v323_v60 }
 0x173   :  { %v290_v63 = vpop.f32.mrf.mxu3 }
 0x174   :  { %v291_v0 = vadd.f32 %v806_v50, %v290_v63  ;;  %373 = vadd.xlane.f32.xlu2 %v343_v62 }
 0x176   :  { %v308_v1 = vmul.f32 0.2, %v291_v0 }
 0x178   :  { %v324_v3 = vmax.f32 %v291_v0, %v308_v1  ;;  %371 = vadd.xlane.f32.xlu1 %v342_v2 }
 0x17a   :  { %v344_v4 = vmul.f32 %v812_v54, %v324_v3 }
 0x17c   :  { %375 = vadd.xlane.f32.xlu0 %v344_v4 }
 0x1ab   :  { %v346_v6 = vpop.xlane.xlu0 %345 }
 0x1ac   :  { %v379_v7 = vadd.f32 %v848_v5, %v346_v6 }
 0x1ae   :  { %v395_v8 = vsub.f32 0.0, %v379_v7 }
 0x1b0   :  { %v411_v9 = vmul.f32 1.442695, %v395_v8 }
 0x1b2   :  { %552 = vpow2.f32 %v411_v9 }
 0x1b3   :  { %v348_v50 = vpop.xlane.xlu0 %347 }
 0x1b4   :  { %v380_v10 = vadd.f32 %v848_v5, %v348_v50 }
 0x1b6   :  { %v396_v11 = vsub.f32 0.0, %v380_v10 }
 0x1b7   :  { %v362_v12 = vpop.xlane.xlu2 %361 }
 0x1b8   :  { %v553_v13 = vpop.eup %552  ;;  %v413_v14 = vmul.f32 1.442695, %v396_v11  ;;  %v387_v54 = vadd.f32 %v848_v5, %v362_v12 }
 0x1b9   :  { %v443_v15 = vadd.f32 1.0, %v553_v13 }
 0x1ba   :  { %554 = vpow2.f32 %v413_v14  ;;  %v403_v16 = vsub.f32 0.0, %v387_v54 }
 0x1bb   :  { %556 = vrcp.f32 %v443_v15  ;;  %v350_v17 = vpop.xlane.xlu1 %349 }
 0x1bc   :  { %v427_v18 = vmul.f32 1.442695, %v403_v16  ;;  %v381_v19 = vadd.f32 %v848_v5, %v350_v17 }
 0x1be   :  { %558 = vpow2.f32 %v427_v18  ;;  %v397_v20 = vsub.f32 0.0, %v381_v19 }
 0x1bf   :  { %v364_v21 = vpop.xlane.xlu0 %363 }
 0x1c0   :  { %v555_v22 = vpop.eup %554  ;;  %v415_v23 = vmul.f32 1.442695, %v397_v20  ;;  %v388_v24 = vadd.f32 %v848_v5, %v364_v21 }
 0x1c1   :  { %v557_v25 = vpop.eup %556  ;;  %v444_v26 = vadd.f32 1.0, %v555_v22 }
 0x1c2   :  { %475 = vst [vmem:[#allocation9] sm:$0xff] %v557_v25  ;;  %560 = vpow2.f32 %v415_v23  ;;  %v404_v27 = vsub.f32 0.0, %v388_v24 }
 0x1c3   :  { %562 = vrcp.f32 %v444_v26  ;;  %v352_v28 = vpop.xlane.xlu1 %351 }
 0x1c4   :  { %v559_v29 = vpop.eup %558  ;;  %v429_v30 = vmul.f32 1.442695, %v404_v27  ;;  %v382_v31 = vadd.f32 %v848_v5, %v352_v28 }
 0x1c5   :  { %v451_v32 = vadd.f32 1.0, %v559_v29 }
 0x1c6   :  { %564 = vpow2.f32 %v429_v30  ;;  %v398_v33 = vsub.f32 0.0, %v382_v31 }
 0x1c7   :  { %566 = vrcp.f32 %v451_v32 }
 0x1c8   :  { %v561_v34 = vpop.eup %560  ;;  %v417_v35 = vmul.f32 1.442695, %v398_v33 }
 0x1c9   :  { %v563_v36 = vpop.eup %562  ;;  %v445_v37 = vadd.f32 1.0, %v561_v34 }
 0x1ca   :  { %476 = vst [vmem:[#allocation9 + $0x8] sm:$0xff] %v563_v36  ;;  %568 = vpow2.f32 %v417_v35 }
 0x1cb   :  { %570 = vrcp.f32 %v445_v37  ;;  %v354_v38 = vpop.xlane.xlu2 %353  ;;  %v366_v39 = vpop.xlane.xlu1 %365 }
 0x1cc   :  { %v565_v40 = vpop.eup %564  ;;  %v383_v41 = vadd.f32 %v848_v5, %v354_v38  ;;  %v389_v42 = vadd.f32 %v848_v5, %v366_v39 }
 0x1cd   :  { %v567_v43 = vpop.eup %566  ;;  %v452_v44 = vadd.f32 1.0, %v565_v40 }
 0x1ce   :  { %483 = vst [vmem:[#allocation9 + $0x40] sm:$0xff] %v567_v43  ;;  %v399_v45 = vsub.f32 0.0, %v383_v41  ;;  %v405_v46 = vsub.f32 0.0, %v389_v42 }
 0x1cf   :  { %572 = vrcp.f32 %v452_v44 }
 0x1d0   :  { %v569_v47 = vpop.eup %568  ;;  %v419_v49 = vmul.f32 1.442695, %v399_v45  ;;  %v431_v51 = vmul.f32 1.442695, %v405_v46 }
 0x1d1   :  { %v571_v52 = vpop.eup %570  ;;  %v446_v53 = vadd.f32 1.0, %v569_v47 }
 0x1d2   :  { %477 = vst [vmem:[#allocation9 + $0x10] sm:$0xff] %v571_v52  ;;  %574 = vpow2.f32 %v419_v49 }
 0x1d3   :  { %576 = vrcp.f32 %v446_v53  ;;  %v368_v55 = vpop.xlane.xlu2 %367 }
 0x1d4   :  { %578 = vpow2.f32 %v431_v51  ;;  %v390_v48 = vadd.f32 %v848_v5, %v368_v55 }
 0x1d5   :  { %v573_v56 = vpop.eup %572 }
 0x1d6   :  { %484 = vst [vmem:[#allocation9 + $0x48] sm:$0xff] %v573_v56  ;;  %v406_v57 = vsub.f32 0.0, %v390_v48 }
 0x1d7   :  { %v370_v58 = vpop.xlane.xlu0 %369 }
 0x1d8   :  { %v575_v59 = vpop.eup %574  ;;  %v433_v60 = vmul.f32 1.442695, %v406_v57  ;;  %v391_v61 = vadd.f32 %v848_v5, %v370_v58 }
 0x1d9   :  { %v577_v62 = vpop.eup %576  ;;  %v447_v63 = vadd.f32 1.0, %v575_v59 }
 0x1da   :  { %v579_v0 = vpop.eup %578  ;;  %478 = vst [vmem:[#allocation9 + $0x18] sm:$0xff] %v577_v62  ;;  %580 = vpow2.f32 %v433_v60  ;;  %v407_v1 = vsub.f32 0.0, %v391_v61 }
 0x1db   :  { %582 = vrcp.f32 %v447_v63  ;;  %v453_v2 = vadd.f32 1.0, %v579_v0  ;;  %v356_v3 = vpop.xlane.xlu2 %355 }
 0x1dc   :  { %v435_v4 = vmul.f32 1.442695, %v407_v1  ;;  %v384_v6 = vadd.f32 %v848_v5, %v356_v3 }
 0x1dd   :  { %584 = vrcp.f32 %v453_v2 }
 0x1de   :  { %586 = vpow2.f32 %v435_v4  ;;  %v400_v7 = vsub.f32 0.0, %v384_v6 }
 0x1df   :  { %v358_v8 = vpop.xlane.xlu0 %357 }
 0x1e0   :  { %v581_v9 = vpop.eup %580  ;;  %v421_v50 = vmul.f32 1.442695, %v400_v7  ;;  %v385_v10 = vadd.f32 %v848_v5, %v358_v8 }
 0x1e1   :  { %v583_v11 = vpop.eup %582  ;;  %v454_v12 = vadd.f32 1.0, %v581_v9 }
 0x1e2   :  { %479 = vst [vmem:[#allocation9 + $0x20] sm:$0xff] %v583_v11  ;;  %588 = vpow2.f32 %v421_v50  ;;  %v401_v13 = vsub.f32 0.0, %v385_v10 }
 0x1e3   :  { %v585_v14 = vpop.eup %584  ;;  %590 = vrcp.f32 %v454_v12  ;;  %v360_v54 = vpop.xlane.xlu1 %359 }
 0x1e4   :  { %v587_v15 = vpop.eup %586  ;;  %485 = vst [vmem:[#allocation9 + $0x50] sm:$0xff] %v585_v14  ;;  %v423_v16 = vmul.f32 1.442695, %v401_v13  ;;  %v386_v17 = vadd.f32 %v848_v5, %v360_v54 }
 0x1e5   :  { %v455_v18 = vadd.f32 1.0, %v587_v15 }
 0x1e6   :  { %592 = vpow2.f32 %v423_v16  ;;  %v402_v19 = vsub.f32 0.0, %v386_v17 }
 0x1e7   :  { %594 = vrcp.f32 %v455_v18  ;;  %v374_v20 = vpop.xlane.xlu2 %373 }
 0x1e8   :  { %v589_v21 = vpop.eup %588  ;;  %v425_v22 = vmul.f32 1.442695, %v402_v19  ;;  %v393_v23 = vadd.f32 %v848_v5, %v374_v20 }
 0x1e9   :  { %v591_v24 = vpop.eup %590  ;;  %v448_v25 = vadd.f32 1.0, %v589_v21 }
 0x1ea   :  { %486 = vst [vmem:[#allocation9 + $0x58] sm:$0xff] %v591_v24  ;;  %596 = vpow2.f32 %v425_v22  ;;  %v409_v26 = vsub.f32 0.0, %v393_v23 }
 0x1eb   :  { %598 = vrcp.f32 %v448_v25  ;;  %v372_v27 = vpop.xlane.xlu1 %371 }
 0x1ec   :  { %v593_v28 = vpop.eup %592  ;;  %v439_v29 = vmul.f32 1.442695, %v409_v26  ;;  %v392_v30 = vadd.f32 %v848_v5, %v372_v27 }
 0x1ed   :  { %v595_v31 = vpop.eup %594  ;;  %v449_v32 = vadd.f32 1.0, %v593_v28 }
 0x1ee   :  { %487 = vst [vmem:[#allocation9 + $0x60] sm:$0xff] %v595_v31  ;;  %600 = vpow2.f32 %v439_v29  ;;  %v408_v33 = vsub.f32 0.0, %v392_v30 }
 0x1ef   :  { %602 = vrcp.f32 %v449_v32  ;;  %v376_v34 = vpop.xlane.xlu0 %375 }
 0x1f0   :  { %v597_v35 = vpop.eup %596  ;;  %v437_v36 = vmul.f32 1.442695, %v408_v33  ;;  %v394_v37 = vadd.f32 %v848_v5, %v376_v34 }
 0x1f1   :  { %v599_v38 = vpop.eup %598  ;;  %v450_v39 = vadd.f32 1.0, %v597_v35 }
 0x1f2   :  { %480 = vst [vmem:[#allocation9 + $0x28] sm:$0xff] %v599_v38  ;;  %604 = vpow2.f32 %v437_v36  ;;  %v410_v40 = vsub.f32 0.0, %v394_v37 }
 0x1f3   :  { %606 = vrcp.f32 %v450_v39 }
 0x1f4   :  { %v601_v41 = vpop.eup %600  ;;  %v441_v42 = vmul.f32 1.442695, %v410_v40 }
 0x1f5   :  { %v603_v43 = vpop.eup %602  ;;  %v457_v44 = vadd.f32 1.0, %v601_v41 }
 0x1f6   :  { %481 = vst [vmem:[#allocation9 + $0x30] sm:$0xff] %v603_v43  ;;  %608 = vpow2.f32 %v441_v42 }
 0x1f7   :  { %610 = vrcp.f32 %v457_v44 }
 0x1f8   :  { %v605_v45 = vpop.eup %604 }
 0x1f9   :  { %v607_v46 = vpop.eup %606  ;;  %v456_v47 = vadd.f32 1.0, %v605_v45 }
 0x1fa   :  { %482 = vst [vmem:[#allocation9 + $0x38] sm:$0xff] %v607_v46 }
 0x1fb   :  { %612 = vrcp.f32 %v456_v47 }
 0x1fc   :  { %v609_v49 = vpop.eup %608 }
 0x1fd   :  { %v611_v5 = vpop.eup %610  ;;  %v458_v51 = vadd.f32 1.0, %v609_v49 }
 0x1fe   :  { %489 = vst [vmem:[#allocation9 + $0x70] sm:$0xff] %v611_v5 }
 0x1ff   :  { %614 = vrcp.f32 %v458_v51 }
 0x201   :  { %v613_v52 = vpop.eup %612 }
 0x202   :  { %488 = vst [vmem:[#allocation9 + $0x68] sm:$0xff] %v613_v52 }
 0x205   :  { %v615_v53 = vpop.eup %614 }
 0x206   :  { %490 = vst [vmem:[#allocation9 + $0x78] sm:$0xff] %v615_v53 }
 0x207   :  { %503 = dma.vmem_to_hbm [thread:$0]  %s496_s20, 2048, %s498_s23, [#allocation5], %s719_s9, %s719_s9, %s720_s10  }
 0x208   :  { %716 = dma.done.wait [#allocation5], 2048  }
 0x209   :  { %717 = vsyncadd [#allocation5], 4294965248 }
 0x20a   :  { %508 = vsyncpa [#allocation4], 1 }
 0x20b   :  { %509 = vsyncpa [#allocation7], 1 }
 0x20c   :  { %510 = vsyncpa [#allocation5], 1 }

</bundles_post_ra>
